<compile_context>
chip_gen: v6e
topology: v6e:2x2x1
jax: 0.10.0
libtpu: 0.0.40
codegen_flags: <defaults>
</compile_context>

<pallas_src>
import numpy as np
import jax
import jax.numpy as jnp
from jax.experimental import pallas as pl
from jax.experimental.pallas import tpu as pltpu

# ---------------------------------------------------------------------------
# Deterministic parameters (exactly the buffers built in SRMFilter.__init__)
# ---------------------------------------------------------------------------
_f1 = np.array([[0, 0, 0, 0, 0],
                [0, -1, 2, -1, 0],
                [0, 2, -4, 2, 0],
                [0, -1, 2, -1, 0],
                [0, 0, 0, 0, 0]], dtype=np.float32)
_f2 = np.array([[-1, 2, -2, 2, -1],
                [2, -6, 8, -6, 2],
                [-2, 8, -12, 8, -2],
                [2, -6, 8, -6, 2],
                [-1, 2, -2, 2, -1]], dtype=np.float32)
_f3 = np.array([[0, 0, 0, 0, 0],
                [0, 0, 0, 0, 0],
                [0, 1, -2, 1, 0],
                [0, 0, 0, 0, 0],
                [0, 0, 0, 0, 0]], dtype=np.float32)
_q = np.array([4.0, 12.0, 2.0], dtype=np.float32)

# Per-output-channel 2D taps applied to the channel-summed plane (3, 5, 5).
# Valid because filters[co, ci] is identical for ci = 0, 1, 2.
W_TAPS = (np.stack([_f1, _f2, _f3]) / _q[:, None, None]).astype(np.float32)

# Full (co, ci, kh, kw) bank, used only by the pure-JAX reference check.
FILTERS = (np.stack([np.stack([_f1, _f1, _f1]),
                     np.stack([_f2, _f2, _f2]),
                     np.stack([_f3, _f3, _f3])])
           / _q[:, None, None, None]).astype(np.float32)

KH, KW = 5, 5
C_OUT, C_IN = 3, 3
PAD = 2  # 'same' padding for a 5x5 kernel, stride 1


# ---------------------------------------------------------------------------
# Pallas kernel: one batch element per grid step.
#   x_ref    : (1, C_IN, H, W)  VMEM tile of the (unpadded) input image
#   o_ref    : (1, C_OUT, H, W) VMEM tile of the output
#   xpad_ref : (H+4, W+4)       VMEM scratch: zero-padded channel-summed plane
# ---------------------------------------------------------------------------
def _srm_kernel(x_ref, o_ref, xpad_ref):
    H = o_ref.shape[2]
    W = o_ref.shape[3]

    # 1) channel sum (the three in-channel taps are identical per filter)
    xs = x_ref[0, 0] + x_ref[0, 1] + x_ref[0, 2]

    # 2) build the zero-padded plane once in VMEM (replaces wrapper-side jnp.pad)
    xpad_ref[...] = jnp.zeros_like(xpad_ref)
    xpad_ref[PAD:PAD + H, PAD:PAD + W] = xs

    # 3) single sweep over the 25 shifted windows; each window feeds all three
    #    output accumulators (zero taps of f1/f3 are skipped at trace time).
    acc = [jnp.zeros((H, W), jnp.float32) for _ in range(C_OUT)]
    for ky in range(KH):
        for kx in range(KW):
            taps = [float(W_TAPS[co, ky, kx]) for co in range(C_OUT)]
            if all(t == 0.0 for t in taps):
                continue
            win = xpad_ref[ky:ky + H, kx:kx + W]
            for co in range(C_OUT):
                if taps[co] != 0.0:
                    acc[co] = acc[co] + taps[co] * win

    # 4) Hardtanh(-2, 2) and store
    for co in range(C_OUT):
        o_ref[0, co, :, :] = jnp.clip(acc[co], -2.0, 2.0)


def srm_filter(x):
    """x: (N, 3, H, W) float32, NCHW. Returns (N, 3, H, W) float32."""
    N, C, H, W = x.shape
    assert C == C_IN, "SRMFilter expects 3 input channels"
    x = x.astype(jnp.float32)

    return pl.pallas_call(
        _srm_kernel,
        out_shape=jax.ShapeDtypeStruct((N, C_OUT, H, W), jnp.float32),
        grid=(N,),
        in_specs=[pl.BlockSpec((1, C_IN, H, W), lambda n: (n, 0, 0, 0))],
        out_specs=pl.BlockSpec((1, C_OUT, H, W), lambda n: (n, 0, 0, 0)),
        scratch_shapes=[pltpu.VMEM((H + 2 * PAD, W + 2 * PAD), jnp.float32)],
        compiler_params=pltpu.CompilerParams(
            dimension_semantics=("parallel",)),
    )(x)


# ---------------------------------------------------------------------------
# Pure-JAX reference (matches the PyTorch module: conv2d 'same' + Hardtanh)
# ---------------------------------------------------------------------------
def _srm_ref(x):
    w = jnp.asarray(FILTERS, dtype=jnp.float32)
    y = jax.lax.conv_general_dilated(
        x.astype(jnp.float32), w, window_strides=(1, 1), padding="SAME",
        dimension_numbers=("NCHW", "OIHW", "NCHW"))
    return jnp.clip(y, -2.0, 2.0)


if __name__ == "__main__":
    key = jax.random.PRNGKey(0)
    x = jax.random.normal(key, (2, 3, 16, 16), dtype=jnp.float32)

    y = srm_filter(x)
    jax.block_until_ready(y)
    assert y.shape == (2, 3, 16, 16) and y.dtype == jnp.float32

    y_ref = _srm_ref(x)
    assert float(jnp.max(jnp.abs(y - y_ref))) < 1e-4

    print("KERNEL_OK")
</pallas_src>

<mosaic_0001>
module attributes {stable_mosaic.version = 11 : i64} {
  func.func @_srm_kernel(%arg0: i32, %arg1: memref<1x3x16x16xf32, #tpu.memory_space<vmem>>, %arg2: memref<1x3x16x16xf32, #tpu.memory_space<vmem>>, %arg3: memref<20x20xf32, #tpu.memory_space<vmem>>) attributes {dimension_semantics = [#tpu.dimension_semantics<parallel>], iteration_bounds = array<i64: 2>, scalar_prefetch = 0 : i64, scratch_operands = 1 : i64, tpu.core_type = #tpu.core_type<tc>, window_params = [{transform_indices = @transform_0, window_bounds = array<i64: 1, 3, 16, 16>}, {transform_indices = @transform_1, window_bounds = array<i64: 1, 3, 16, 16>}]} {
    %c0 = arith.constant 0 : index
    %c0_0 = arith.constant 0 : index
    %c0_1 = arith.constant 0 : index
    %c0_2 = arith.constant 0 : index
    %0 = vector.load %arg1[%c0, %c0_0, %c0_1, %c0_2] : memref<1x3x16x16xf32, #tpu.memory_space<vmem>>, vector<1x1x16x16xf32>
    %1 = vector.shape_cast %0 : vector<1x1x16x16xf32> to vector<16x16xf32>
    %c0_3 = arith.constant 0 : index
    %c1 = arith.constant 1 : index
    %c0_4 = arith.constant 0 : index
    %c0_5 = arith.constant 0 : index
    %2 = vector.load %arg1[%c0_3, %c1, %c0_4, %c0_5] : memref<1x3x16x16xf32, #tpu.memory_space<vmem>>, vector<1x1x16x16xf32>
    %3 = vector.shape_cast %2 : vector<1x1x16x16xf32> to vector<16x16xf32>
    %4 = arith.addf %1, %3 : vector<16x16xf32>
    %c0_6 = arith.constant 0 : index
    %c2 = arith.constant 2 : index
    %c0_7 = arith.constant 0 : index
    %c0_8 = arith.constant 0 : index
    %5 = vector.load %arg1[%c0_6, %c2, %c0_7, %c0_8] : memref<1x3x16x16xf32, #tpu.memory_space<vmem>>, vector<1x1x16x16xf32>
    %6 = vector.shape_cast %5 : vector<1x1x16x16xf32> to vector<16x16xf32>
    %7 = arith.addf %4, %6 : vector<16x16xf32>
    %cst = arith.constant 0.000000e+00 : f32
    %8 = vector.broadcast %cst : f32 to vector<20x20xf32>
    %c0_9 = arith.constant 0 : index
    %c0_10 = arith.constant 0 : index
    %9 = vector.load %arg3[%c0_9, %c0_10] : memref<20x20xf32, #tpu.memory_space<vmem>>, vector<20x20xf32>
    tpu.vector_store %arg3[%c0_9, %c0_10], %8 {strides = array<i32>} : memref<20x20xf32, #tpu.memory_space<vmem>>, vector<20x20xf32>,
    %c2_11 = arith.constant 2 : index
    %c2_12 = arith.constant 2 : index
    %10 = vector.load %arg3[%c2_11, %c2_12] : memref<20x20xf32, #tpu.memory_space<vmem>>, vector<16x16xf32>
    tpu.vector_store %arg3[%c2_11, %c2_12], %7 {strides = array<i32>} : memref<20x20xf32, #tpu.memory_space<vmem>>, vector<16x16xf32>,
    %cst_13 = arith.constant 0.000000e+00 : f32
    %11 = vector.broadcast %cst_13 : f32 to vector<16x16xf32>
    %cst_14 = arith.constant 0.000000e+00 : f32
    %12 = vector.broadcast %cst_14 : f32 to vector<16x16xf32>
    %cst_15 = arith.constant 0.000000e+00 : f32
    %13 = vector.broadcast %cst_15 : f32 to vector<16x16xf32>
    %c0_16 = arith.constant 0 : index
    %c0_17 = arith.constant 0 : index
    %14 = vector.load %arg3[%c0_16, %c0_17] : memref<20x20xf32, #tpu.memory_space<vmem>>, vector<16x16xf32>
    %cst_18 = arith.constant -0.0833333358 : f32
    %15 = vector.broadcast %cst_18 : f32 to vector<16x16xf32>
    %16 = arith.mulf %15, %14 : vector<16x16xf32>
    %17 = arith.addf %12, %16 : vector<16x16xf32>
    %c0_19 = arith.constant 0 : index
    %c1_20 = arith.constant 1 : index
    %18 = vector.load %arg3[%c0_19, %c1_20] : memref<20x20xf32, #tpu.memory_space<vmem>>, vector<16x16xf32>
    %cst_21 = arith.constant 0.166666672 : f32
    %19 = vector.broadcast %cst_21 : f32 to vector<16x16xf32>
    %20 = arith.mulf %19, %18 : vector<16x16xf32>
    %21 = arith.addf %17, %20 : vector<16x16xf32>
    %c0_22 = arith.constant 0 : index
    %c2_23 = arith.constant 2 : index
    %22 = vector.load %arg3[%c0_22, %c2_23] : memref<20x20xf32, #tpu.memory_space<vmem>>, vector<16x16xf32>
    %cst_24 = arith.constant -0.166666672 : f32
    %23 = vector.broadcast %cst_24 : f32 to vector<16x16xf32>
    %24 = arith.mulf %23, %22 : vector<16x16xf32>
    %25 = arith.addf %21, %24 : vector<16x16xf32>
    %c0_25 = arith.constant 0 : index
    %c3 = arith.constant 3 : index
    %26 = vector.load %arg3[%c0_25, %c3] : memref<20x20xf32, #tpu.memory_space<vmem>>, vector<16x16xf32>
    %cst_26 = arith.constant 0.166666672 : f32
    %27 = vector.broadcast %cst_26 : f32 to vector<16x16xf32>
    %28 = arith.mulf %27, %26 : vector<16x16xf32>
    %29 = arith.addf %25, %28 : vector<16x16xf32>
    %c0_27 = arith.constant 0 : index
    %c4 = arith.constant 4 : index
    %30 = vector.load %arg3[%c0_27, %c4] : memref<20x20xf32, #tpu.memory_space<vmem>>, vector<16x16xf32>
    %cst_28 = arith.constant -0.0833333358 : f32
    %31 = vector.broadcast %cst_28 : f32 to vector<16x16xf32>
    %32 = arith.mulf %31, %30 : vector<16x16xf32>
    %33 = arith.addf %29, %32 : vector<16x16xf32>
    %c1_29 = arith.constant 1 : index
    %c0_30 = arith.constant 0 : index
    %34 = vector.load %arg3[%c1_29, %c0_30] : memref<20x20xf32, #tpu.memory_space<vmem>>, vector<16x16xf32>
    %cst_31 = arith.constant 0.166666672 : f32
    %35 = vector.broadcast %cst_31 : f32 to vector<16x16xf32>
    %36 = arith.mulf %35, %34 : vector<16x16xf32>
    %37 = arith.addf %33, %36 : vector<16x16xf32>
    %c1_32 = arith.constant 1 : index
    %c1_33 = arith.constant 1 : index
    %38 = vector.load %arg3[%c1_32, %c1_33] : memref<20x20xf32, #tpu.memory_space<vmem>>, vector<16x16xf32>
    %cst_34 = arith.constant -2.500000e-01 : f32
    %39 = vector.broadcast %cst_34 : f32 to vector<16x16xf32>
    %40 = arith.mulf %39, %38 : vector<16x16xf32>
    %41 = arith.addf %11, %40 : vector<16x16xf32>
    %cst_35 = arith.constant -5.000000e-01 : f32
    %42 = vector.broadcast %cst_35 : f32 to vector<16x16xf32>
    %43 = arith.mulf %42, %38 : vector<16x16xf32>
    %44 = arith.addf %37, %43 : vector<16x16xf32>
    %c1_36 = arith.constant 1 : index
    %c2_37 = arith.constant 2 : index
    %45 = vector.load %arg3[%c1_36, %c2_37] : memref<20x20xf32, #tpu.memory_space<vmem>>, vector<16x16xf32>
    %cst_38 = arith.constant 5.000000e-01 : f32
    %46 = vector.broadcast %cst_38 : f32 to vector<16x16xf32>
    %47 = arith.mulf %46, %45 : vector<16x16xf32>
    %48 = arith.addf %41, %47 : vector<16x16xf32>
    %cst_39 = arith.constant 0.666666686 : f32
    %49 = vector.broadcast %cst_39 : f32 to vector<16x16xf32>
    %50 = arith.mulf %49, %45 : vector<16x16xf32>
    %51 = arith.addf %44, %50 : vector<16x16xf32>
    %c1_40 = arith.constant 1 : index
    %c3_41 = arith.constant 3 : index
    %52 = vector.load %arg3[%c1_40, %c3_41] : memref<20x20xf32, #tpu.memory_space<vmem>>, vector<16x16xf32>
    %cst_42 = arith.constant -2.500000e-01 : f32
    %53 = vector.broadcast %cst_42 : f32 to vector<16x16xf32>
    %54 = arith.mulf %53, %52 : vector<16x16xf32>
    %55 = arith.addf %48, %54 : vector<16x16xf32>
    %cst_43 = arith.constant -5.000000e-01 : f32
    %56 = vector.broadcast %cst_43 : f32 to vector<16x16xf32>
    %57 = arith.mulf %56, %52 : vector<16x16xf32>
    %58 = arith.addf %51, %57 : vector<16x16xf32>
    %c1_44 = arith.constant 1 : index
    %c4_45 = arith.constant 4 : index
    %59 = vector.load %arg3[%c1_44, %c4_45] : memref<20x20xf32, #tpu.memory_space<vmem>>, vector<16x16xf32>
    %cst_46 = arith.constant 0.166666672 : f32
    %60 = vector.broadcast %cst_46 : f32 to vector<16x16xf32>
    %61 = arith.mulf %60, %59 : vector<16x16xf32>
    %62 = arith.addf %58, %61 : vector<16x16xf32>
    %c2_47 = arith.constant 2 : index
    %c0_48 = arith.constant 0 : index
    %63 = vector.load %arg3[%c2_47, %c0_48] : memref<20x20xf32, #tpu.memory_space<vmem>>, vector<16x16xf32>
    %cst_49 = arith.constant -0.166666672 : f32
    %64 = vector.broadcast %cst_49 : f32 to vector<16x16xf32>
    %65 = arith.mulf %64, %63 : vector<16x16xf32>
    %66 = arith.addf %62, %65 : vector<16x16xf32>
    %c2_50 = arith.constant 2 : index
    %c1_51 = arith.constant 1 : index
    %67 = vector.load %arg3[%c2_50, %c1_51] : memref<20x20xf32, #tpu.memory_space<vmem>>, vector<16x16xf32>
    %cst_52 = arith.constant 5.000000e-01 : f32
    %68 = vector.broadcast %cst_52 : f32 to vector<16x16xf32>
    %69 = arith.mulf %68, %67 : vector<16x16xf32>
    %70 = arith.addf %55, %69 : vector<16x16xf32>
    %cst_53 = arith.constant 0.666666686 : f32
    %71 = vector.broadcast %cst_53 : f32 to vector<16x16xf32>
    %72 = arith.mulf %71, %67 : vector<16x16xf32>
    %73 = arith.addf %66, %72 : vector<16x16xf32>
    %cst_54 = arith.constant 5.000000e-01 : f32
    %74 = vector.broadcast %cst_54 : f32 to vector<16x16xf32>
    %75 = arith.mulf %74, %67 : vector<16x16xf32>
    %76 = arith.addf %13, %75 : vector<16x16xf32>
    %c2_55 = arith.constant 2 : index
    %c2_56 = arith.constant 2 : index
    %77 = vector.load %arg3[%c2_55, %c2_56] : memref<20x20xf32, #tpu.memory_space<vmem>>, vector<16x16xf32>
    %cst_57 = arith.constant -1.000000e+00 : f32
    %78 = vector.broadcast %cst_57 : f32 to vector<16x16xf32>
    %79 = arith.mulf %78, %77 : vector<16x16xf32>
    %80 = arith.addf %70, %79 : vector<16x16xf32>
    %cst_58 = arith.constant -1.000000e+00 : f32
    %81 = vector.broadcast %cst_58 : f32 to vector<16x16xf32>
    %82 = arith.mulf %81, %77 : vector<16x16xf32>
    %83 = arith.addf %73, %82 : vector<16x16xf32>
    %cst_59 = arith.constant -1.000000e+00 : f32
    %84 = vector.broadcast %cst_59 : f32 to vector<16x16xf32>
    %85 = arith.mulf %84, %77 : vector<16x16xf32>
    %86 = arith.addf %76, %85 : vector<16x16xf32>
    %c2_60 = arith.constant 2 : index
    %c3_61 = arith.constant 3 : index
    %87 = vector.load %arg3[%c2_60, %c3_61] : memref<20x20xf32, #tpu.memory_space<vmem>>, vector<16x16xf32>
    %cst_62 = arith.constant 5.000000e-01 : f32
    %88 = vector.broadcast %cst_62 : f32 to vector<16x16xf32>
    %89 = arith.mulf %88, %87 : vector<16x16xf32>
    %90 = arith.addf %80, %89 : vector<16x16xf32>
    %cst_63 = arith.constant 0.666666686 : f32
    %91 = vector.broadcast %cst_63 : f32 to vector<16x16xf32>
    %92 = arith.mulf %91, %87 : vector<16x16xf32>
    %93 = arith.addf %83, %92 : vector<16x16xf32>
    %cst_64 = arith.constant 5.000000e-01 : f32
    %94 = vector.broadcast %cst_64 : f32 to vector<16x16xf32>
    %95 = arith.mulf %94, %87 : vector<16x16xf32>
    %96 = arith.addf %86, %95 : vector<16x16xf32>
    %c2_65 = arith.constant 2 : index
    %c4_66 = arith.constant 4 : index
    %97 = vector.load %arg3[%c2_65, %c4_66] : memref<20x20xf32, #tpu.memory_space<vmem>>, vector<16x16xf32>
    %cst_67 = arith.constant -0.166666672 : f32
    %98 = vector.broadcast %cst_67 : f32 to vector<16x16xf32>
    %99 = arith.mulf %98, %97 : vector<16x16xf32>
    %100 = arith.addf %93, %99 : vector<16x16xf32>
    %c3_68 = arith.constant 3 : index
    %c0_69 = arith.constant 0 : index
    %101 = vector.load %arg3[%c3_68, %c0_69] : memref<20x20xf32, #tpu.memory_space<vmem>>, vector<16x16xf32>
    %cst_70 = arith.constant 0.166666672 : f32
    %102 = vector.broadcast %cst_70 : f32 to vector<16x16xf32>
    %103 = arith.mulf %102, %101 : vector<16x16xf32>
    %104 = arith.addf %100, %103 : vector<16x16xf32>
    %c3_71 = arith.constant 3 : index
    %c1_72 = arith.constant 1 : index
    %105 = vector.load %arg3[%c3_71, %c1_72] : memref<20x20xf32, #tpu.memory_space<vmem>>, vector<16x16xf32>
    %cst_73 = arith.constant -2.500000e-01 : f32
    %106 = vector.broadcast %cst_73 : f32 to vector<16x16xf32>
    %107 = arith.mulf %106, %105 : vector<16x16xf32>
    %108 = arith.addf %90, %107 : vector<16x16xf32>
    %cst_74 = arith.constant -5.000000e-01 : f32
    %109 = vector.broadcast %cst_74 : f32 to vector<16x16xf32>
    %110 = arith.mulf %109, %105 : vector<16x16xf32>
    %111 = arith.addf %104, %110 : vector<16x16xf32>
    %c3_75 = arith.constant 3 : index
    %c2_76 = arith.constant 2 : index
    %112 = vector.load %arg3[%c3_75, %c2_76] : memref<20x20xf32, #tpu.memory_space<vmem>>, vector<16x16xf32>
    %cst_77 = arith.constant 5.000000e-01 : f32
    %113 = vector.broadcast %cst_77 : f32 to vector<16x16xf32>
    %114 = arith.mulf %113, %112 : vector<16x16xf32>
    %115 = arith.addf %108, %114 : vector<16x16xf32>
    %cst_78 = arith.constant 0.666666686 : f32
    %116 = vector.broadcast %cst_78 : f32 to vector<16x16xf32>
    %117 = arith.mulf %116, %112 : vector<16x16xf32>
    %118 = arith.addf %111, %117 : vector<16x16xf32>
    %c3_79 = arith.constant 3 : index
    %c3_80 = arith.constant 3 : index
    %119 = vector.load %arg3[%c3_79, %c3_80] : memref<20x20xf32, #tpu.memory_space<vmem>>, vector<16x16xf32>
    %cst_81 = arith.constant -2.500000e-01 : f32
    %120 = vector.broadcast %cst_81 : f32 to vector<16x16xf32>
    %121 = arith.mulf %120, %119 : vector<16x16xf32>
    %122 = arith.addf %115, %121 : vector<16x16xf32>
    %cst_82 = arith.constant -5.000000e-01 : f32
    %123 = vector.broadcast %cst_82 : f32 to vector<16x16xf32>
    %124 = arith.mulf %123, %119 : vector<16x16xf32>
    %125 = arith.addf %118, %124 : vector<16x16xf32>
    %c3_83 = arith.constant 3 : index
    %c4_84 = arith.constant 4 : index
    %126 = vector.load %arg3[%c3_83, %c4_84] : memref<20x20xf32, #tpu.memory_space<vmem>>, vector<16x16xf32>
    %cst_85 = arith.constant 0.166666672 : f32
    %127 = vector.broadcast %cst_85 : f32 to vector<16x16xf32>
    %128 = arith.mulf %127, %126 : vector<16x16xf32>
    %129 = arith.addf %125, %128 : vector<16x16xf32>
    %c4_86 = arith.constant 4 : index
    %c0_87 = arith.constant 0 : index
    %130 = vector.load %arg3[%c4_86, %c0_87] : memref<20x20xf32, #tpu.memory_space<vmem>>, vector<16x16xf32>
    %cst_88 = arith.constant -0.0833333358 : f32
    %131 = vector.broadcast %cst_88 : f32 to vector<16x16xf32>
    %132 = arith.mulf %131, %130 : vector<16x16xf32>
    %133 = arith.addf %129, %132 : vector<16x16xf32>
    %c4_89 = arith.constant 4 : index
    %c1_90 = arith.constant 1 : index
    %134 = vector.load %arg3[%c4_89, %c1_90] : memref<20x20xf32, #tpu.memory_space<vmem>>, vector<16x16xf32>
    %cst_91 = arith.constant 0.166666672 : f32
    %135 = vector.broadcast %cst_91 : f32 to vector<16x16xf32>
    %136 = arith.mulf %135, %134 : vector<16x16xf32>
    %137 = arith.addf %133, %136 : vector<16x16xf32>
    %c4_92 = arith.constant 4 : index
    %c2_93 = arith.constant 2 : index
    %138 = vector.load %arg3[%c4_92, %c2_93] : memref<20x20xf32, #tpu.memory_space<vmem>>, vector<16x16xf32>
    %cst_94 = arith.constant -0.166666672 : f32
    %139 = vector.broadcast %cst_94 : f32 to vector<16x16xf32>
    %140 = arith.mulf %139, %138 : vector<16x16xf32>
    %141 = arith.addf %137, %140 : vector<16x16xf32>
    %c4_95 = arith.constant 4 : index
    %c3_96 = arith.constant 3 : index
    %142 = vector.load %arg3[%c4_95, %c3_96] : memref<20x20xf32, #tpu.memory_space<vmem>>, vector<16x16xf32>
    %cst_97 = arith.constant 0.166666672 : f32
    %143 = vector.broadcast %cst_97 : f32 to vector<16x16xf32>
    %144 = arith.mulf %143, %142 : vector<16x16xf32>
    %145 = arith.addf %141, %144 : vector<16x16xf32>
    %c4_98 = arith.constant 4 : index
    %c4_99 = arith.constant 4 : index
    %146 = vector.load %arg3[%c4_98, %c4_99] : memref<20x20xf32, #tpu.memory_space<vmem>>, vector<16x16xf32>
    %cst_100 = arith.constant -0.0833333358 : f32
    %147 = vector.broadcast %cst_100 : f32 to vector<16x16xf32>
    %148 = arith.mulf %147, %146 : vector<16x16xf32>
    %149 = arith.addf %145, %148 : vector<16x16xf32>
    %cst_101 = arith.constant -2.000000e+00 : f32
    %cst_102 = arith.constant 2.000000e+00 : f32
    %150 = vector.broadcast %cst_101 : f32 to vector<16x16xf32>
    %151 = arith.maximumf %150, %122 : vector<16x16xf32>
    %152 = vector.broadcast %cst_102 : f32 to vector<16x16xf32>
    %153 = arith.minimumf %152, %151 : vector<16x16xf32>
    %c0_103 = arith.constant 0 : index
    %c0_104 = arith.constant 0 : index
    %c0_105 = arith.constant 0 : index
    %c0_106 = arith.constant 0 : index
    %154 = vector.load %arg2[%c0_103, %c0_104, %c0_105, %c0_106] : memref<1x3x16x16xf32, #tpu.memory_space<vmem>>, vector<1x1x16x16xf32>
    %155 = vector.shape_cast %154 : vector<1x1x16x16xf32> to vector<16x16xf32>
    %156 = vector.shape_cast %153 : vector<16x16xf32> to vector<1x1x16x16xf32>
    tpu.vector_store %arg2[%c0_103, %c0_104, %c0_105, %c0_106], %156 {strides = array<i32>} : memref<1x3x16x16xf32, #tpu.memory_space<vmem>>, vector<1x1x16x16xf32>,
    %cst_107 = arith.constant -2.000000e+00 : f32
    %cst_108 = arith.constant 2.000000e+00 : f32
    %157 = vector.broadcast %cst_107 : f32 to vector<16x16xf32>
    %158 = arith.maximumf %157, %149 : vector<16x16xf32>
    %159 = vector.broadcast %cst_108 : f32 to vector<16x16xf32>
    %160 = arith.minimumf %159, %158 : vector<16x16xf32>
    %c0_109 = arith.constant 0 : index
    %c1_110 = arith.constant 1 : index
    %c0_111 = arith.constant 0 : index
    %c0_112 = arith.constant 0 : index
    %161 = vector.load %arg2[%c0_109, %c1_110, %c0_111, %c0_112] : memref<1x3x16x16xf32, #tpu.memory_space<vmem>>, vector<1x1x16x16xf32>
    %162 = vector.shape_cast %161 : vector<1x1x16x16xf32> to vector<16x16xf32>
    %163 = vector.shape_cast %160 : vector<16x16xf32> to vector<1x1x16x16xf32>
    tpu.vector_store %arg2[%c0_109, %c1_110, %c0_111, %c0_112], %163 {strides = array<i32>} : memref<1x3x16x16xf32, #tpu.memory_space<vmem>>, vector<1x1x16x16xf32>,
    %cst_113 = arith.constant -2.000000e+00 : f32
    %cst_114 = arith.constant 2.000000e+00 : f32
    %164 = vector.broadcast %cst_113 : f32 to vector<16x16xf32>
    %165 = arith.maximumf %164, %96 : vector<16x16xf32>
    %166 = vector.broadcast %cst_114 : f32 to vector<16x16xf32>
    %167 = arith.minimumf %166, %165 : vector<16x16xf32>
    %c0_115 = arith.constant 0 : index
    %c2_116 = arith.constant 2 : index
    %c0_117 = arith.constant 0 : index
    %c0_118 = arith.constant 0 : index
    %168 = vector.load %arg2[%c0_115, %c2_116, %c0_117, %c0_118] : memref<1x3x16x16xf32, #tpu.memory_space<vmem>>, vector<1x1x16x16xf32>
    %169 = vector.shape_cast %168 : vector<1x1x16x16xf32> to vector<16x16xf32>
    %170 = vector.shape_cast %167 : vector<16x16xf32> to vector<1x1x16x16xf32>
    tpu.vector_store %arg2[%c0_115, %c2_116, %c0_117, %c0_118], %170 {strides = array<i32>} : memref<1x3x16x16xf32, #tpu.memory_space<vmem>>, vector<1x1x16x16xf32>,
    return
  }
  func.func @transform_0(%arg0: i32) -> (i32, i32, i32, i32) {
    %c0_i32 = arith.constant 0 : i32
    %c0_i32_0 = arith.constant 0 : i32
    %c0_i32_1 = arith.constant 0 : i32
    %c0_i32_2 = arith.constant 0 : i32
    return %arg0, %c0_i32, %c0_i32_0, %c0_i32_1 : i32, i32, i32, i32
  }
  func.func @transform_1(%arg0: i32) -> (i32, i32, i32, i32) {
    %c0_i32 = arith.constant 0 : i32
    %c0_i32_0 = arith.constant 0 : i32
    %c0_i32_1 = arith.constant 0 : i32
    %c0_i32_2 = arith.constant 0 : i32
    return %arg0, %c0_i32, %c0_i32_0, %c0_i32_1 : i32, i32, i32, i32
  }
}

</mosaic_0001>

<bundles_post_ra>
// kernel: tpu_custom_call.1
= control target key start
LH: loop header
LB: loop body
LE: loop exit
PB: predicated region body
PF: predicated region fallthrough
CT: control target
= control target key end

     0   :  { %6 = vsyncpa [#allocation4], 0  ;;  %s1105_s0 = inlined_call_operand.hbm [shape: f32[2,3,16,16], index: 0, kind: input, shape index: {}]   ;;  %s1106_s1 = inlined_call_operand.hbm [shape: f32[2,3,16,16], index: 1, kind: output, shape index: {}]  }
   0x1   :  { %8 = vsyncpa [#allocation4 + $0x1], 0 }
   0x2   :  { %9 = vsyncpa [#allocation5], 0 }
   0x3   :  { %11 = vsyncpa [#allocation5 + $0x1], 0  ;;  %s805_s6 = smov 0   ;;  %s807_s7 = smov 0  }
   0x4   :  { %s809_s8 = smov 0   ;;  %s811_s9 = smov 0  }
   0x5 LB: > { %s826_s10 = sadd.s32 4294967295, %s781_s9   ;;  %s607_s11 = sadd.s32 4294967294, %s781_s9   ;;  %s781_s9 = sphi %s811_s9, %s1120_s9   ;;  %s777_s8 = sphi %s809_s8, %s1119_s8   ;;  %s773_s7 = sphi %s807_s7, %s1118_s7   ;;  %s769_s6 = sphi %s805_s6, %s1117_s6  }
   0x6   : > { %s830_s12 = sadd.s32 1, %s781_s9   ;;  %s24_s13 = sadd.s32 1, %s777_s8 }
   0x7   : > { %s21_s14 = ssub.s32 %s781_s9, %s830_s12  ;;  %p31_p0 = scmp.ne.s32.totalorder %s777_s8, %s773_s7 }
   0x8   : > { %p22_p1 = scmp.eq.s32.totalorder %s21_s14, 0  ;;  %p32_p2 = scmp.eq.s32.totalorder %s781_s9, 0 }
   0x9   : > { %p37_p3 = scmp.ne.s32.totalorder %s773_s7, %s769_s6  ;;  %p38_p4 = scmp.eq.s32.totalorder %s826_s10, 0 }
   0xa   : > { %s842_s15 = scalar_select %p22_p1, %s777_s8, %s24_s13  }
   0xb   : > { %p33_p5 = por %p32_p2, %p31_p0  ;;  %p844_p6 = por %p38_p4, %p37_p3 }
   0xc   : > { %p61_p7 = scmp.eq.s32.totalorder %s826_s10, 1  ;;  %p67_p8 = scmp.eq.s32.totalorder %s607_s11, 1 }
   0xd   : > { %s1109_s16 = scalar_select %p844_p6, 1, 0 }
   0xe   : > { %p645_p10 = scmp.lt.s32.totalorder %s781_s9, 2  ;;  %p851_p11 = por %p61_p7, %p31_p0 }
   0xf   : > { %p855_p12 = por %p67_p8, %p37_p3  ;;  %s87_s19 = sand.u32 1, %s777_s8  }
  0x10   : > { %s1110_s17 = scalar_select %p851_p11, 1, 0 }
  0x11   : > { %s1111_s18 = scalar_select %p855_p12, 1, 0 }
  0x12   : > { %s630_s20 = smul.u32 768, %s781_s9  ;;  %p866_p13 = pnand %p645_p10, %p33_p5 }
  0x13   : > { %s629_s21 = smul.u32 48, %s87_s19  ;;  %s872_s28 = scalar_lea.sflag [#allocation4], %s87_s19 }
  0x14   : > { %s864_s24 = scalar_lea.hbm %s1105_s0, %s630_s20  ;;  %p691_p1 = pneg %p866_p13 }
  0x15   : > { %s91_s26 = scalar_lea.vmem [#allocation3], %s629_s21  ;;  %s689_s29 = scalar_lea.hbm %s864_s24, 768 }
  0x16   : > { %s98_s27 = sshll.u32 %s91_s26, 4  ;;  %p690_p0 = scmp.ne.s32.totalorder %s864_s24, %s689_s29  ;;  %s870_s27 = int_to_ptr.vmem [resolvable:$true] %s98_s27 }
  0x17   : > { %s694_s3 = scalar_lea.hbm %s1105_s0, 1536  ;;  %p695_p4 = scmp.lt.s32.totalorder %s864_s24, %s1105_s0 }
  0x18   : > { %p692_p2 = pnand %p691_p1, %p690_p0  ;;  %p696_p5 = scmp.lt.s32.totalorder %s694_s3, %s689_s29 }
  0x1a   : > { %p693_p3 = pneg %p692_p2  ;;  %p697_p7 = por %p696_p5, %p695_p4 }
  0x1c   : > { %p698_p8 = pnand %p697_p7, %p693_p3 }
  0x1e   : > { %701 = shalt.err (!%p698_p8)
}
  0x1f   : > { %s702_s11 = scalar_lea.vmem %s870_s27, 768  ;;  %s783_s13 = smov [#allocation3]  }
  0x20   : > { %p703_p10 = scmp.ne.s32.totalorder %s870_s27, %s702_s11  ;;  %s707_s14 = sshll.u32 %s783_s13, 4  ;;  %s708_s14 = int_to_ptr.vmem [resolvable:$false] %s707_s14 }
  0x21   : > { %s709_s19 = scalar_lea.vmem %s708_s14, 1536  ;;  %p710_p2 = scmp.lt.s32.totalorder %s870_s27, %s708_s14 }
  0x22   : > { %p705_p9 = pnand %p703_p10, %p691_p1  ;;  %p711_p12 = scmp.lt.s32.totalorder %s709_s19, %s702_s11 }
  0x24   : > { %p706_p0 = pneg %p705_p9  ;;  %p712_p11 = por %p711_p12, %p710_p2 }
  0x26   : > { %p713_p6 = pnand %p712_p11, %p706_p0 }
  0x28   : > { %716 = shalt.err (!%p713_p6)
}
  0x29   : > { %s784_s20 = smov 128   ;;  %s785_s21 = smov 8  }
  0x2a   : > { %640 = dma.hbm_to_vmem [thread:$0]  (!%p866_p13), %s864_s24, 768, %s870_s27, %s872_s28, %s784_s20, %s784_s20, %s785_s21  }
  0x2b   : > { %p611_p9 = scmp.ge.s32.totalorder %s781_s9, 1  ;;  %p106_p1 = scmp.lt.s32.totalorder %s781_s9, 3 }
  0x2d   : > { %p107_p3 = pnand %p611_p9, %p106_p1 }
  0x2e   : > { %s896_s22 = sand.u32 (!%p107_p3), 1, %s773_s7   ;;  %p1113_p6 = scmp.ne.s32.totalorder (!%p107_p3), %s1109_s16, 0 }
  0x2f   : > { %110 = sbr.rel (%p107_p3) target bundleno = 459 (0x1cb), region = 24  ;;  %s113_s26 = scalar_lea.sflag (!%p107_p3), [#allocation4], %s896_s22 }
  0x30   : > { %s631_s23 = smul.u32 (!%p107_p3), 48, %s896_s22 }
  0x32   : > { %s116_s29 = scalar_lea.vmem (!%p107_p3), [#allocation3], %s631_s23 }
  0x34   : > { %760 = dma.done.wait (%p1113_p6), %s113_s26, 768  }
  0x35   : > { %762 = vsyncadd (%p1113_p6), %s113_s26, 4294966528  ;;  %vm147_vm0 = vcmask 162816   ;;  %vm150_vm1 = vcmask 158720   ;;  %v786_v0 = vmov 0.0   ;;  %v135_v1 = vld [vmem:[%s116_s29] sm:$0xff]  ;;  %v612_v2 = vld [vmem:[%s116_s29 + $0x10] sm:$0xff] }
  0x36   : > { %148 = vst.msk [vmem:[#allocation2] sm:$0xff] %vm147_vm0, %v786_v0  ;;  %149 = vst.msk [vmem:[#allocation2 + $0x8] sm:$0xff] %vm147_vm0, %v786_v0  ;;  %v614_v3 = vld [vmem:[%s116_s29 + $0x20] sm:$0xff]  ;;  %v140_v4 = vadd.f32 %v612_v2, %v135_v1  ;;  %v136_v5 = vld [vmem:[%s116_s29 + $0x8] sm:$0xff]  ;;  %s787_s24 = smov 2   ;;  %vm160_vm2 = vcmask 146448  }
  0x37   : > { %151 = vst.msk [vmem:[#allocation2 + $0x10] sm:$0xf] %vm150_vm1, %v786_v0  ;;  %v613_v6 = vld [vmem:[%s116_s29 + $0x18] sm:$0xff]  ;;  %v615_v8 = vld [vmem:[%s116_s29 + $0x28] sm:$0xff]  ;;  %s788_s16 = smov 127   ;;  %s789_s25 = smov 126  }
  0x38   : > { %v141_v7 = vadd.f32 %v613_v6, %v136_v5  ;;  %v145_v9 = vadd.f32 %v614_v3, %v140_v4  ;;  %s790_s27 = smov 125   ;;  %s791_s28 = smov 124   ;;  %vm495_vm3 = vcmask 130048  }
  0x39   : > { %s134_s30 = scalar_lea.vmem [#allocation6], %s631_s23  ;;  %s632_s3 = smul.u32 768, %s826_s10 }
  0x3a   : > { %154 = vrot.lane.b32.xlu0 %v145_v9, %s787_s24  ;;  %v146_v10 = vadd.f32 %v615_v8, %v141_v7  ;;  %s534_s2 = sshll.u32 %s134_s30, 4  ;;  %s521_s13 = scalar_lea.sflag [#allocation5], %s896_s22  ;;  %s1055_s2 = int_to_ptr.vmem [resolvable:$true] %s534_s2 }
  0x3b   : > { %s1061_s11 = scalar_lea.hbm %s1106_s1, %s632_s3  ;;  %s717_s14 = scalar_lea.vmem %s1055_s2, 768 }
  0x3c   : > { %p718_p11 = scmp.ne.s32.totalorder %s1055_s2, %s717_s14  ;;  %p1114_p12 = scmp.ne.s32.totalorder %s1110_s17, 0 }
  0x3d   : > { %s792_s10 = smov [#allocation6]  }
  0x3e   : > { %156 = vrot.lane.b32.xlu0 %v146_v10, %s787_s24  ;;  %p719_p13 = pnand %p718_p11, %p1114_p12  ;;  %s721_s19 = sshll.u32 %s792_s10, 4  ;;  %s722_s19 = int_to_ptr.vmem [resolvable:$false] %s721_s19 }
  0x3f   : > { %s723_s20 = scalar_lea.vmem %s722_s19, 1536  ;;  %p724_p5 = scmp.lt.s32.totalorder %s1055_s2, %s722_s19 }
  0x40   : > { %p720_p4 = pneg %p719_p13  ;;  %p725_p7 = scmp.lt.s32.totalorder %s723_s20, %s717_s14 }
  0x42   : > { %p726_p8 = por %p725_p7, %p724_p5 }
  0x44   : > { %p727_p10 = pnand %p726_p8, %p720_p4 }
  0xac   : > { %v155_v11 = vpop.permute.xlu0 %154 }
  0xad   : > { %161 = vst.msk [vmem:[#allocation2 + $0x2] sm:$0xff] %vm160_vm2, %v155_v11 }
  0xb0   : > { %v157_v12 = vpop.permute.xlu0 %156 }
  0xb1   : > { %162 = vst.msk [vmem:[#allocation2 + $0xa] sm:$0xff] %vm160_vm2, %v157_v12 }
  0xb4   : > { %v211_v13 = vld [vmem:[#allocation2 + $0x1] sm:$0xff] }
  0xb5   : > { %v233_v14 = vmul.f32 0.5, %v211_v13  ;;  %v906_v15 = vmul.f32 -0.25, %v211_v13  ;;  %v908_v16 = vld [vmem:[#allocation2 + $0x2] sm:$0xff]  ;;  %v221_v38 = vmul.f32 -0.5, %v211_v13  ;;  %v245_v39 = vmul.f32 0.6666667, %v211_v13 }
  0xb6   : > { %v309_v18 = vmul.f32 -1.0, %v908_v16  ;;  %v917_v20 = vmul.f32 0.5, %v908_v16  ;;  %v163_v28 = vld [vmem:[#allocation2] sm:$0xff]  ;;  %v966_v42 = vmul.f32 0.16666667, %v211_v13 }
  0xb7   : > { %237 = vrot.lane.b32.xlu1 %v233_v14, %s788_s16  ;;  %259 = vrot.lane.b32.xlu0 %v906_v15, %s789_s25  ;;  %v169_v30 = vmul.f32 0.16666667, %v163_v28  ;;  %v181_v32 = vmul.f32 -0.16666667, %v163_v28  ;;  %v952_v36 = vmul.f32 -0.083333336, %v163_v28 }
  0xb8   : > { %v212_v17 = vld [vmem:[#allocation2 + $0x9] sm:$0xff]  ;;  %v295_v44 = vmul.f32 0.6666667, %v908_v16  ;;  %v982_v47 = vmul.f32 -0.16666667, %v908_v16 }
  0xb9   : > { %v234_v19 = vmul.f32 0.5, %v212_v17  ;;  %v919_v21 = vmul.f32 -0.25, %v212_v17  ;;  %v921_v22 = vld [vmem:[#allocation2 + $0x3] sm:$0xff]  ;;  %v935_v29 = vld [vmem:[#allocation2 + $0xb] sm:$0xff]  ;;  %v222_v41 = vmul.f32 -0.5, %v212_v17 }
  0xba   : > { %v286_v23 = vld [vmem:[#allocation2 + $0xa] sm:$0xff]  ;;  %v383_v24 = vmul.f32 0.5, %v921_v22  ;;  %v931_v26 = vmul.f32 -0.25, %v921_v22  ;;  %v384_v31 = vmul.f32 0.5, %v935_v29  ;;  %v945_v33 = vmul.f32 -0.25, %v935_v29 }
  0xbb   : > { %313 = vrot.lane.b32.xlu0 %v309_v18, %s788_s16  ;;  %239 = vrot.lane.b32.xlu1 %v234_v19, %s788_s16  ;;  %v310_v25 = vmul.f32 -1.0, %v286_v23  ;;  %v933_v27 = vmul.f32 0.5, %v286_v23  ;;  %v164_v34 = vld [vmem:[#allocation2 + $0x8] sm:$0xff]  ;;  %v246_v43 = vmul.f32 0.6666667, %v212_v17  ;;  %v371_v48 = vmul.f32 -0.5, %v921_v22 }
  0xbc   : > { %v170_v35 = vmul.f32 0.16666667, %v164_v34  ;;  %v182_v37 = vmul.f32 -0.16666667, %v164_v34  ;;  %v959_v40 = vmul.f32 -0.083333336, %v164_v34 }
  0xbd   : > { %v974_v45 = vmul.f32 0.16666667, %v212_v17  ;;  %v296_v46 = vmul.f32 0.6666667, %v286_v23  ;;  %v395_v49 = vmul.f32 0.6666667, %v921_v22 }
  0xbe   : > { %v991_v50 = vmul.f32 -0.16666667, %v286_v23  ;;  %v372_v51 = vmul.f32 -0.5, %v935_v29  ;;  %v1000_v52 = vmul.f32 0.16666667, %v921_v22  ;;  %v435_v54 = vld [vmem:[#allocation2 + $0x4] sm:$0xff] }
  0xbf   : > { %333 = vrot.lane.b32.xlu0 %v917_v20, %s789_s25  ;;  %261 = vrot.lane.b32.xlu1 %v919_v21, %s789_s25  ;;  %v396_v53 = vmul.f32 0.6666667, %v935_v29  ;;  %v441_v55 = vmul.f32 0.16666667, %v435_v54  ;;  %v453_v56 = vmul.f32 -0.16666667, %v435_v54 }
  0xc0   : > { %v1009_v57 = vmul.f32 0.16666667, %v935_v29  ;;  %v436_v58 = vld [vmem:[#allocation2 + $0xc] sm:$0xff]  ;;  %v1016_v60 = vmul.f32 -0.083333336, %v435_v54 }
  0xc1   : > { %v442_v59 = vmul.f32 0.16666667, %v436_v58  ;;  %v454_v61 = vmul.f32 -0.16666667, %v436_v58  ;;  %v1022_v62 = vmul.f32 -0.083333336, %v436_v58 }
  0xc3   : > { %387 = vrot.lane.b32.xlu0 %v383_v24, %s788_s16  ;;  %315 = vrot.lane.b32.xlu1 %v310_v25, %s788_s16 }
  0xc7   : > { %409 = vrot.lane.b32.xlu0 %v931_v26, %s789_s25  ;;  %335 = vrot.lane.b32.xlu1 %v933_v27, %s789_s25 }
  0xcb   : > { %173 = vrot.lane.b32.xlu0 %v169_v30, %s788_s16  ;;  %389 = vrot.lane.b32.xlu1 %v384_v31, %s788_s16 }
  0xcf   : > { %185 = vrot.lane.b32.xlu0 %v181_v32, %s789_s25  ;;  %411 = vrot.lane.b32.xlu1 %v945_v33, %s789_s25 }
  0xd3   : > { %193 = vrot.lane.b32.xlu0 %v169_v30, %s790_s27  ;;  %175 = vrot.lane.b32.xlu1 %v170_v35, %s788_s16 }
  0xd7   : > { %203 = vrot.lane.b32.xlu0 %v952_v36, %s791_s28  ;;  %187 = vrot.lane.b32.xlu1 %v182_v37, %s789_s25 }
  0xdb   : > { %225 = vrot.lane.b32.xlu0 %v221_v38, %s788_s16  ;;  %195 = vrot.lane.b32.xlu1 %v170_v35, %s790_s27 }
  0xdf   : > { %249 = vrot.lane.b32.xlu0 %v245_v39, %s789_s25  ;;  %205 = vrot.lane.b32.xlu1 %v959_v40, %s791_s28 }
  0xe3   : > { %267 = vrot.lane.b32.xlu0 %v221_v38, %s790_s27  ;;  %227 = vrot.lane.b32.xlu1 %v222_v41, %s788_s16 }
  0xe7   : > { %277 = vrot.lane.b32.xlu0 %v966_v42, %s791_s28  ;;  %251 = vrot.lane.b32.xlu1 %v246_v43, %s789_s25 }
  0xeb   : > { %299 = vrot.lane.b32.xlu0 %v295_v44, %s788_s16  ;;  %269 = vrot.lane.b32.xlu1 %v222_v41, %s790_s27 }
  0xef   : > { %321 = vrot.lane.b32.xlu0 %v309_v18, %s789_s25  ;;  %279 = vrot.lane.b32.xlu1 %v974_v45, %s791_s28 }
  0xf3   : > { %341 = vrot.lane.b32.xlu0 %v295_v44, %s790_s27  ;;  %301 = vrot.lane.b32.xlu1 %v296_v46, %s788_s16 }
  0xf7   : > { %353 = vrot.lane.b32.xlu0 %v982_v47, %s791_s28  ;;  %323 = vrot.lane.b32.xlu1 %v310_v25, %s789_s25 }
  0xfb   : > { %375 = vrot.lane.b32.xlu0 %v371_v48, %s788_s16  ;;  %343 = vrot.lane.b32.xlu1 %v296_v46, %s790_s27 }
  0xff   : > { %399 = vrot.lane.b32.xlu0 %v395_v49, %s789_s25  ;;  %355 = vrot.lane.b32.xlu1 %v991_v50, %s791_s28 }
 0x103   : > { %417 = vrot.lane.b32.xlu0 %v371_v48, %s790_s27  ;;  %377 = vrot.lane.b32.xlu1 %v372_v51, %s788_s16 }
 0x107   : > { %427 = vrot.lane.b32.xlu0 %v1000_v52, %s791_s28  ;;  %401 = vrot.lane.b32.xlu1 %v396_v53, %s789_s25 }
 0x10b   : > { %445 = vrot.lane.b32.xlu0 %v441_v55, %s788_s16  ;;  %419 = vrot.lane.b32.xlu1 %v372_v51, %s790_s27 }
 0x10f   : > { %457 = vrot.lane.b32.xlu0 %v453_v56, %s789_s25  ;;  %429 = vrot.lane.b32.xlu1 %v1009_v57, %s791_s28 }
 0x113   : > { %465 = vrot.lane.b32.xlu0 %v441_v55, %s790_s27  ;;  %447 = vrot.lane.b32.xlu1 %v442_v59, %s788_s16 }
 0x117   : > { %475 = vrot.lane.b32.xlu0 %v1016_v60, %s791_s28  ;;  %459 = vrot.lane.b32.xlu1 %v454_v61, %s789_s25 }
 0x11b   : > { %467 = vrot.lane.b32.xlu1 %v442_v59, %s790_s27 }
 0x11f   : > { %477 = vrot.lane.b32.xlu1 %v1022_v62, %s791_s28 }
 0x129   : > { %v238_v63 = vpop.permute.xlu1 %237  ;;  %v260_v0 = vpop.permute.xlu0 %259 }
 0x12a   : > { %v243_v1 = vadd.f32 %v238_v63, %v906_v15 }
 0x12c   : > { %v265_v2 = vadd.f32 %v260_v0, %v243_v1 }
 0x12d   : > { %v240_v3 = vpop.permute.xlu1 %239  ;;  %v314_v4 = vpop.permute.xlu0 %313 }
 0x12e   : > { %v293_v5 = vadd.f32 %v917_v20, %v265_v2  ;;  %v244_v6 = vadd.f32 %v240_v3, %v919_v21  ;;  %v329_v22 = vadd.f32 %v314_v4, %v917_v20 }
 0x130   : > { %v319_v7 = vadd.f32 %v314_v4, %v293_v5 }
 0x131   : > { %v262_v8 = vpop.permute.xlu1 %261  ;;  %v334_v9 = vpop.permute.xlu0 %333 }
 0x132   : > { %v266_v10 = vadd.f32 %v262_v8, %v244_v6  ;;  %v339_v11 = vadd.f32 %v334_v9, %v319_v7  ;;  %v349_v21 = vadd.f32 %v334_v9, %v329_v22 }
 0x134   : > { %v294_v12 = vadd.f32 %v933_v27, %v266_v10  ;;  %v369_v13 = vadd.f32 %v931_v26, %v339_v11  ;;  %v622_v31 = vclamps-f32 %v349_v21, 2.0 }
 0x135   : > { %v316_v14 = vpop.permute.xlu1 %315  ;;  %v388_v16 = vpop.permute.xlu0 %387 }
 0x136   : > { %v320_v17 = vadd.f32 %v316_v14, %v294_v12  ;;  %v393_v15 = vadd.f32 %v388_v16, %v369_v13  ;;  %v330_v35 = vadd.f32 %v316_v14, %v933_v27 }
 0x139   : > { %v336_v18 = vpop.permute.xlu1 %335  ;;  %v410_v19 = vpop.permute.xlu0 %409 }
 0x13a   : > { %v340_v23 = vadd.f32 %v336_v18, %v320_v17  ;;  %v415_v24 = vadd.f32 %v410_v19, %v393_v15  ;;  %v350_v20 = vadd.f32 %v336_v18, %v330_v35 }
 0x13c   : > { %v616_v25 = vclamps-f32 %v415_v24, 2.0  ;;  %v370_v28 = vadd.f32 %v945_v33, %v340_v23  ;;  %v623_v33 = vclamps-f32 %v350_v20, 2.0 }
 0x13d   : > { %v390_v29 = vpop.permute.xlu1 %389  ;;  %v174_v30 = vpop.permute.xlu0 %173 }
 0x13e   : > { %489 = vrot.lane.b32.xlu0 %v616_v25, %s788_s16  ;;  %v394_v26 = vadd.f32 %v390_v29, %v370_v28  ;;  %v179_v46 = vadd.f32 %v174_v30, %v952_v36 }
 0x141   : > { %v412_v32 = vpop.permute.xlu1 %411  ;;  %v186_v34 = vpop.permute.xlu0 %185 }
 0x142   : > { %v416_v37 = vadd.f32 %v412_v32, %v394_v26  ;;  %511 = vrot.lane.b32.xlu0 %v622_v31, %s788_s16  ;;  %v191_v51 = vadd.f32 %v186_v34, %v179_v46 }
 0x144   : > { %v617_v38 = vclamps-f32 %v416_v37, 2.0 }
 0x145   : > { %v176_v39 = vpop.permute.xlu1 %175  ;;  %v194_v41 = vpop.permute.xlu0 %193 }
 0x146   : > { %491 = vrot.lane.b32.xlu1 %v617_v38, %s788_s16  ;;  %v199_v27 = vadd.f32 %v194_v41, %v191_v51  ;;  %v180_v56 = vadd.f32 %v176_v39, %v959_v40 }
 0x149   : > { %v188_v43 = vpop.permute.xlu1 %187  ;;  %v204_v44 = vpop.permute.xlu0 %203 }
 0x14a   : > { %513 = vrot.lane.b32.xlu1 %v623_v33, %s788_s16  ;;  %v209_v55 = vadd.f32 %v204_v44, %v199_v27  ;;  %v192_v61 = vadd.f32 %v188_v43, %v180_v56 }
 0x14c   : > { %v215_v63 = vadd.f32 %v966_v42, %v209_v55 }
 0x14d   : > { %v196_v48 = vpop.permute.xlu1 %195  ;;  %v226_v49 = vpop.permute.xlu0 %225 }
 0x14e   : > { %v200_v0 = vadd.f32 %v196_v48, %v192_v61  ;;  %v231_v3 = vadd.f32 %v226_v49, %v215_v63 }
 0x151   : > { %v206_v53 = vpop.permute.xlu1 %205  ;;  %v250_v54 = vpop.permute.xlu0 %249 }
 0x152   : > { %v210_v4 = vadd.f32 %v206_v53, %v200_v0  ;;  %v255_v36 = vadd.f32 %v250_v54, %v231_v3 }
 0x154   : > { %v216_v7 = vadd.f32 %v974_v45, %v210_v4 }
 0x155   : > { %v228_v58 = vpop.permute.xlu1 %227  ;;  %v268_v59 = vpop.permute.xlu0 %267 }
 0x156   : > { %v273_v8 = vadd.f32 %v268_v59, %v255_v36  ;;  %v232_v40 = vadd.f32 %v228_v58, %v216_v7 }
 0x159   : > { %v252_v1 = vpop.permute.xlu1 %251  ;;  %v278_v2 = vpop.permute.xlu0 %277 }
 0x15a   : > { %v283_v9 = vadd.f32 %v278_v2, %v273_v8  ;;  %v256_v12 = vadd.f32 %v252_v1, %v232_v40 }
 0x15c   : > { %v289_v13 = vadd.f32 %v982_v47, %v283_v9 }
 0x15d   : > { %v270_v5 = vpop.permute.xlu1 %269  ;;  %v300_v6 = vpop.permute.xlu0 %299 }
 0x15e   : > { %v274_v16 = vadd.f32 %v270_v5, %v256_v12  ;;  %v305_v17 = vadd.f32 %v300_v6, %v289_v13 }
 0x161   : > { %v280_v10 = vpop.permute.xlu1 %279  ;;  %v322_v11 = vpop.permute.xlu0 %321 }
 0x162   : > { %v284_v15 = vadd.f32 %v280_v10, %v274_v16  ;;  %v327_v22 = vadd.f32 %v322_v11, %v305_v17 }
 0x164   : > { %v290_v23 = vadd.f32 %v991_v50, %v284_v15 }
 0x165   : > { %v302_v14 = vpop.permute.xlu1 %301  ;;  %v342_v42 = vpop.permute.xlu0 %341 }
 0x166   : > { %v347_v24 = vadd.f32 %v342_v42, %v327_v22  ;;  %v306_v28 = vadd.f32 %v302_v14, %v290_v23 }
 0x169   : > { %v324_v18 = vpop.permute.xlu1 %323  ;;  %v354_v19 = vpop.permute.xlu0 %353 }
 0x16a   : > { %v359_v25 = vadd.f32 %v354_v19, %v347_v24  ;;  %v328_v31 = vadd.f32 %v324_v18, %v306_v28 }
 0x16c   : > { %v365_v47 = vadd.f32 %v1000_v52, %v359_v25 }
 0x16d   : > { %v344_v45 = vpop.permute.xlu1 %343  ;;  %v376_v21 = vpop.permute.xlu0 %375 }
 0x16e   : > { %v348_v26 = vadd.f32 %v344_v45, %v328_v31  ;;  %v381_v35 = vadd.f32 %v376_v21, %v365_v47 }
 0x171   : > { %v356_v29 = vpop.permute.xlu1 %355  ;;  %v400_v30 = vpop.permute.xlu0 %399 }
 0x172   : > { %v360_v37 = vadd.f32 %v356_v29, %v348_v26  ;;  %v405_v20 = vadd.f32 %v400_v30, %v381_v35 }
 0x174   : > { %v366_v50 = vadd.f32 %v1009_v57, %v360_v37 }
 0x175   : > { %v378_v32 = vpop.permute.xlu1 %377  ;;  %v418_v34 = vpop.permute.xlu0 %417 }
 0x176   : > { %v423_v41 = vadd.f32 %v418_v34, %v405_v20  ;;  %v382_v46 = vadd.f32 %v378_v32, %v366_v50 }
 0x179   : > { %v402_v38 = vpop.permute.xlu1 %401  ;;  %v428_v39 = vpop.permute.xlu0 %427 }
 0x17a   : > { %v433_v33 = vadd.f32 %v428_v39, %v423_v41  ;;  %v406_v48 = vadd.f32 %v402_v38, %v382_v46 }
 0x17c   : > { %v439_v49 = vadd.f32 %v1016_v60, %v433_v33 }
 0x17d   : > { %v420_v43 = vpop.permute.xlu1 %419  ;;  %v446_v44 = vpop.permute.xlu0 %445 }
 0x17e   : > { %v424_v27 = vadd.f32 %v420_v43, %v406_v48  ;;  %v451_v53 = vadd.f32 %v446_v44, %v439_v49 }
 0x181   : > { %v430_v51 = vpop.permute.xlu1 %429  ;;  %v458_v52 = vpop.permute.xlu0 %457 }
 0x182   : > { %v434_v54 = vadd.f32 %v430_v51, %v424_v27  ;;  %v463_v58 = vadd.f32 %v458_v52, %v451_v53 }
 0x184   : > { %v440_v59 = vadd.f32 %v1022_v62, %v434_v54 }
 0x185   : > { %v448_v55 = vpop.permute.xlu1 %447  ;;  %v466_v56 = vpop.permute.xlu0 %465 }
 0x186   : > { %v471_v57 = vadd.f32 %v466_v56, %v463_v58  ;;  %v452_v1 = vadd.f32 %v448_v55, %v440_v59 }
 0x189   : > { %v460_v61 = vpop.permute.xlu1 %459  ;;  %v476_v63 = vpop.permute.xlu0 %475 }
 0x18a   : > { %v481_v0 = vadd.f32 %v476_v63, %v471_v57  ;;  %v464_v3 = vadd.f32 %v460_v61, %v452_v1 }
 0x18c   : > { %v618_v2 = vclamps-f32 %v481_v0, 2.0 }
 0x18d   : > { %v468_v60 = vpop.permute.xlu1 %467 }
 0x18e   : > { %620 = vst.msk [vmem:[%s134_s30 + $0x10] sm:$0xff] %vm495_vm3, %v618_v2  ;;  %v472_v4 = vadd.f32 %v468_v60, %v464_v3 }
 0x191   : > { %v478_v36 = vpop.permute.xlu1 %477 }
 0x192   : > { %v482_v5 = vadd.f32 %v478_v36, %v472_v4 }
 0x194   : > { %v619_v6 = vclamps-f32 %v482_v5, 2.0 }
 0x196   : > { %621 = vst.msk [vmem:[%s134_s30 + $0x18] sm:$0xff] %vm495_vm3, %v619_v6 }
 0x1b0   : > { %v490_v62 = vpop.permute.xlu0 %489 }
 0x1b1   : > { %496 = vst.msk [vmem:[%s134_s30] sm:$0xff] %vm495_vm3, %v490_v62 }
 0x1b4   : > { %v512_v7 = vpop.permute.xlu0 %511 }
 0x1b5   : > { %624 = vst.msk [vmem:[%s134_s30 + $0x20] sm:$0xff] %vm495_vm3, %v512_v7 }
 0x1b8   : > { %v492_v8 = vpop.permute.xlu1 %491 }
 0x1b9   : > { %497 = vst.msk [vmem:[%s134_s30 + $0x8] sm:$0xff] %vm495_vm3, %v492_v8 }
 0x1bc   : > { %v514_v9 = vpop.permute.xlu1 %513 }
 0x1bd   : > { %625 = vst.msk [vmem:[%s134_s30 + $0x28] sm:$0xff] %vm495_vm3, %v514_v9 }
 0x1be   : > { %730 = shalt.err (!%p727_p10)
}
 0x1bf   : > { %s731_s21 = scalar_lea.hbm %s1061_s11, 768  ;;  %s735_s29 = scalar_lea.hbm %s1106_s1, 1536 }
 0x1c0   : > { %p732_p0 = scmp.ne.s32.totalorder %s1061_s11, %s731_s21  ;;  %p736_p1 = scmp.lt.s32.totalorder %s1061_s11, %s1106_s1 }
 0x1c1   : > { %p737_p3 = scmp.lt.s32.totalorder %s735_s29, %s731_s21 }
 0x1c2   : > { %p733_p2 = pnand %p732_p0, %p1114_p12 }
 0x1c3   : > { %p738_p6 = por %p737_p3, %p736_p1 }
 0x1c4   : > { %p734_p9 = pneg %p733_p2 }
 0x1c6   : > { %p739_p11 = pnand %p738_p6, %p734_p9 }
 0x1c8   : > { %742 = shalt.err (!%p739_p11)
}
 0x1c9   : > { %s793_s25 = smov 128   ;;  %s794_s27 = smov 8  }
 0x1ca   : > { %635 = dma.vmem_to_hbm [thread:$0]  (%p1114_p12), %s1055_s2, 768, %s1061_s11, %s521_s13, %s793_s25, %s793_s25, %s794_s27  }
 0x1cb PF: > { %s549_s28 = sand.u32 1, %s769_s6   ;;  %p1115_p13 = scmp.ne.s32.totalorder %s1111_s18, 0 }
 0x1cc   : > { %p1116_p4 = scmp.ge.s32.totalorder %s781_s9, 2  ;;  %s550_s30 = scalar_lea.sflag [#allocation5], %s549_s28 }
 0x1ce   : > { %p642_p5 = pnand %p1116_p4, %p1115_p13 }
 0x1d0   : > { %p643_p7 = pneg %p642_p5 }
 0x1d2   : > { %764 = dma.done.wait (%p643_p7), %s550_s30, 768  }
 0x1d3   : > { %766 = vsyncadd (%p643_p7), %s550_s30, 4294966528  ;;  %p14_p8 = scmp.ge.s32.totalorder %s830_s12, 4   ;;  %s1117_s6 = smov %s773_s7 }
 0x1d4   : > { %s1118_s7 = smov %s777_s8  ;;  %s1119_s8 = smov %s842_s15 }
 0x1d5   : > { %s1120_s9 = smov %s830_s12  ;;  %16 = sbr.rel (!%p14_p8) target bundleno = 5 (0x5), region = 73 }
 0x1da   :  { %555 = vsyncpa [#allocation4], 1 }
 0x1db   :  { %557 = vsyncpa [#allocation4 + $0x1], 1 }
 0x1dc   :  { %558 = vsyncpa [#allocation5], 1 }
 0x1dd   :  { %560 = vsyncpa [#allocation5 + $0x1], 1 }

</bundles_post_ra>
